<compile_context>
chip_gen: v7x
topology: tpu7x:2x2x1
jax: 0.10.0
libtpu: 0.0.40
codegen_flags: <defaults>
</compile_context>

<pallas_src>
import jax
import jax.numpy as jnp
from jax.experimental import pallas as pl
from jax.experimental.pallas import tpu as pltpu

LANE = 128       # TPU lane width
SUBLANE = 8      # f32/bf16 sublane granularity
MAX_BLOCK_B = 512  # multiple of 128 and 256 -> MXU-M friendly on v5e/v6e/v7x


def _round_up(n, m):
    return ((n + m - 1) // m) * m


def mlp_kernel(x_ref,
               w1_ref, b1_ref,
               w2_ref, b2_ref,
               w3_ref, b3_ref,
               w4_ref, b4_ref,
               o_ref):
    """One batch tile: 4 fused MXU matmuls (bf16 operands, f32 accumulate)."""
    x = x_ref[...]                                                   # bf16 (tb, in)

    h = jnp.dot(x, w1_ref[...], preferred_element_type=jnp.float32) + b1_ref[...]
    h = jnp.maximum(h, 0.0).astype(jnp.bfloat16)

    h = jnp.dot(h, w2_ref[...], preferred_element_type=jnp.float32) + b2_ref[...]
    h = jnp.maximum(h, 0.0).astype(jnp.bfloat16)

    h = jnp.dot(h, w3_ref[...], preferred_element_type=jnp.float32) + b3_ref[...]
    h = jnp.maximum(h, 0.0).astype(jnp.bfloat16)

    h = jnp.dot(h, w4_ref[...], preferred_element_type=jnp.float32) + b4_ref[...]

    o_ref[...] = h.astype(o_ref.dtype)                               # lane-dense store


def mesh_to_e_fastnet(x, params, *, block_b=None):
    """Run the 4-layer MLP as a single Pallas kernel, tiled over the batch."""
    B, input_dim = x.shape
    (w1, b1), (w2, b2), (w3, b3), (w4, b4) = params
    output_dim = w4.shape[1]

    # ---- pad final layer to a lane-dense (multiple of 128) output ----
    out_pad = _round_up(output_dim, LANE)
    if out_pad != output_dim:
        w4 = jnp.pad(w4, ((0, 0), (0, out_pad - output_dim)))
        b4 = jnp.pad(b4, ((0, 0), (0, out_pad - output_dim)))

    # ---- batch tiling (multiple of 8 sublanes, capped so intermediates stay small) ----
    if block_b is None:
        block_b = min(MAX_BLOCK_B, _round_up(B, SUBLANE))
    assert block_b % SUBLANE == 0, "block_b must be a multiple of 8 (sublane granularity)"
    B_pad = _round_up(B, block_b)
    if B_pad != B:
        x = jnp.pad(x, ((0, B_pad - B), (0, 0)))
    grid = (B_pad // block_b,)

    # ---- bf16 operands for the MXU, f32 biases / accumulation ----
    x_bf = x.astype(jnp.bfloat16)
    w1, w2, w3, w4 = (w.astype(jnp.bfloat16) for w in (w1, w2, w3, w4))
    b1, b2, b3, b4 = (b.astype(jnp.float32) for b in (b1, b2, b3, b4))

    def x_map(i):
        return (i, 0)

    def resident_map(i):          # weights/biases: same block every step -> stay resident
        return (0, 0)

    weight_specs = []
    for w, b in ((w1, b1), (w2, b2), (w3, b3), (w4, b4)):
        weight_specs.append(pl.BlockSpec(w.shape, resident_map))
        weight_specs.append(pl.BlockSpec(b.shape, resident_map))

    out = pl.pallas_call(
        mlp_kernel,
        out_shape=jax.ShapeDtypeStruct((B_pad, out_pad), jnp.float32),
        grid_spec=pltpu.PrefetchScalarGridSpec(
            num_scalar_prefetch=0,
            grid=grid,
            in_specs=[pl.BlockSpec((block_b, input_dim), x_map)] + weight_specs,
            out_specs=pl.BlockSpec((block_b, out_pad), x_map),
        ),
        compiler_params=pltpu.CompilerParams(
            dimension_semantics=("parallel",),      # lets v7x's 2 TCs split the batch grid
            vmem_limit_bytes=32 * 1024 * 1024,      # explicit; tiles use far less
        ),
    )(x_bf, w1, b1, w2, b2, w3, b3, w4, b4)

    return out[:B, :output_dim]


def init_params(key, input_dim, output_dim):
    """Deterministic PyTorch-style Linear init: U(-1/sqrt(fan_in), 1/sqrt(fan_in))."""
    dims = [input_dim, 256, 128, 64, output_dim]
    params = []
    for i in range(4):
        fan_in, fan_out = dims[i], dims[i + 1]
        key, kw, kb = jax.random.split(key, 3)
        bound = 1.0 / jnp.sqrt(fan_in)
        w = jax.random.uniform(kw, (fan_in, fan_out), jnp.float32, -bound, bound)
        b = jax.random.uniform(kb, (1, fan_out), jnp.float32, -bound, bound)
        params.append((w, b))
    return params


def reference_forward(x, params):
    h = x
    for i, (w, b) in enumerate(params):
        h = h @ w + b
        if i < 3:
            h = jnp.maximum(h, 0.0)
    return h


if __name__ == "__main__":
    key = jax.random.PRNGKey(0)
    key, kx = jax.random.split(key)

    batch = 64
    input_dim = 32
    output_dim = 16

    x = jax.random.normal(kx, (batch, input_dim), jnp.float32)
    params = init_params(key, input_dim, output_dim)

    # Exercise a multi-step grid (4 batch tiles) at this small shape.
    out = mesh_to_e_fastnet(x, params, block_b=16)
    out = jax.block_until_ready(out)

    ref = reference_forward(x, params)
    assert out.shape == (batch, output_dim)
    # bf16 operands / f32 accumulation vs. pure-f32 reference -> loosened tolerance.
    assert jnp.allclose(out, ref, atol=2e-2, rtol=2e-2), "mismatch vs reference"

    # Also check the default (single-tile) path used for the deployed B<=512 shapes.
    out2 = jax.block_until_ready(mesh_to_e_fastnet(x, params))
    assert jnp.allclose(out2, ref, atol=2e-2, rtol=2e-2), "mismatch vs reference (default tile)"

    print("KERNEL_OK")
</pallas_src>

<mosaic_0001>
module attributes {stable_mosaic.version = 11 : i64} {
  func.func @mlp_kernel(%arg0: i32, %arg1: memref<16x32xbf16, #tpu.memory_space<vmem>>, %arg2: memref<32x256xbf16, #tpu.memory_space<vmem>>, %arg3: memref<1x256xf32, #tpu.memory_space<vmem>>, %arg4: memref<256x128xbf16, #tpu.memory_space<vmem>>, %arg5: memref<1x128xf32, #tpu.memory_space<vmem>>, %arg6: memref<128x64xbf16, #tpu.memory_space<vmem>>, %arg7: memref<1x64xf32, #tpu.memory_space<vmem>>, %arg8: memref<64x128xbf16, #tpu.memory_space<vmem>>, %arg9: memref<1x128xf32, #tpu.memory_space<vmem>>, %arg10: memref<16x128xf32, #tpu.memory_space<vmem>>) attributes {dimension_semantics = [#tpu.dimension_semantics<parallel>], iteration_bounds = array<i64: 4>, scalar_prefetch = 0 : i64, scratch_operands = 0 : i64, tpu.core_type = #tpu.core_type<tc>, window_params = [{transform_indices = @transform_0, window_bounds = array<i64: 16, 32>}, {pipeline_mode = #tpu.pipeline_mode<synchronous>, transform_indices = @transform_1, window_bounds = array<i64: 32, 256>}, {pipeline_mode = #tpu.pipeline_mode<synchronous>, transform_indices = @transform_2, window_bounds = array<i64: 1, 256>}, {pipeline_mode = #tpu.pipeline_mode<synchronous>, transform_indices = @transform_3, window_bounds = array<i64: 256, 128>}, {pipeline_mode = #tpu.pipeline_mode<synchronous>, transform_indices = @transform_4, window_bounds = array<i64: 1, 128>}, {pipeline_mode = #tpu.pipeline_mode<synchronous>, transform_indices = @transform_5, window_bounds = array<i64: 128, 64>}, {pipeline_mode = #tpu.pipeline_mode<synchronous>, transform_indices = @transform_6, window_bounds = array<i64: 1, 64>}, {pipeline_mode = #tpu.pipeline_mode<synchronous>, transform_indices = @transform_7, window_bounds = array<i64: 64, 128>}, {pipeline_mode = #tpu.pipeline_mode<synchronous>, transform_indices = @transform_8, window_bounds = array<i64: 1, 128>}, {transform_indices = @transform_9, window_bounds = array<i64: 16, 128>}]} {
    %c0 = arith.constant 0 : index
    %c0_0 = arith.constant 0 : index
    %0 = vector.load %arg1[%c0, %c0_0] : memref<16x32xbf16, #tpu.memory_space<vmem>>, vector<16x32xbf16>
    %c0_1 = arith.constant 0 : index
    %c0_2 = arith.constant 0 : index
    %1 = vector.load %arg2[%c0_1, %c0_2] : memref<32x256xbf16, #tpu.memory_space<vmem>>, vector<32x256xbf16>
    %cst = arith.constant dense<0.000000e+00> : vector<16x256xf32>
    %2 = tpu.matmul %0, %1, %cst {dimension_numbers = #tpu.dot_dimension_numbers<[1], [0], [0], [1], [0, 0, 1, 1], [], []>} : vector<16x32xbf16>, vector<32x256xbf16>, vector<16x256xf32> -> vector<16x256xf32>
    %c0_3 = arith.constant 0 : index
    %c0_4 = arith.constant 0 : index
    %3 = vector.load %arg3[%c0_3, %c0_4] : memref<1x256xf32, #tpu.memory_space<vmem>>, vector<1x256xf32>
    %4 = vector.broadcast %3 : vector<1x256xf32> to vector<16x256xf32>
    %5 = arith.addf %2, %4 : vector<16x256xf32>
    %cst_5 = arith.constant 0.000000e+00 : f32
    %6 = vector.broadcast %cst_5 : f32 to vector<16x256xf32>
    %7 = arith.maximumf %5, %6 : vector<16x256xf32>
    %8 = arith.truncf %7 : vector<16x256xf32> to vector<16x256xbf16>
    %c0_6 = arith.constant 0 : index
    %c0_7 = arith.constant 0 : index
    %9 = vector.load %arg4[%c0_6, %c0_7] : memref<256x128xbf16, #tpu.memory_space<vmem>>, vector<256x128xbf16>
    %cst_8 = arith.constant dense<0.000000e+00> : vector<16x128xf32>
    %10 = tpu.matmul %8, %9, %cst_8 {dimension_numbers = #tpu.dot_dimension_numbers<[1], [0], [0], [1], [0, 0, 1, 1], [], []>} : vector<16x256xbf16>, vector<256x128xbf16>, vector<16x128xf32> -> vector<16x128xf32>
    %c0_9 = arith.constant 0 : index
    %c0_10 = arith.constant 0 : index
    %11 = vector.load %arg5[%c0_9, %c0_10] : memref<1x128xf32, #tpu.memory_space<vmem>>, vector<1x128xf32>
    %12 = vector.broadcast %11 : vector<1x128xf32> to vector<16x128xf32>
    %13 = arith.addf %10, %12 : vector<16x128xf32>
    %cst_11 = arith.constant 0.000000e+00 : f32
    %14 = vector.broadcast %cst_11 : f32 to vector<16x128xf32>
    %15 = arith.maximumf %13, %14 : vector<16x128xf32>
    %16 = arith.truncf %15 : vector<16x128xf32> to vector<16x128xbf16>
    %c0_12 = arith.constant 0 : index
    %c0_13 = arith.constant 0 : index
    %17 = vector.load %arg6[%c0_12, %c0_13] : memref<128x64xbf16, #tpu.memory_space<vmem>>, vector<128x64xbf16>
    %cst_14 = arith.constant dense<0.000000e+00> : vector<16x64xf32>
    %18 = tpu.matmul %16, %17, %cst_14 {dimension_numbers = #tpu.dot_dimension_numbers<[1], [0], [0], [1], [0, 0, 1, 1], [], []>} : vector<16x128xbf16>, vector<128x64xbf16>, vector<16x64xf32> -> vector<16x64xf32>
    %c0_15 = arith.constant 0 : index
    %c0_16 = arith.constant 0 : index
    %19 = vector.load %arg7[%c0_15, %c0_16] : memref<1x64xf32, #tpu.memory_space<vmem>>, vector<1x64xf32>
    %20 = vector.broadcast %19 : vector<1x64xf32> to vector<16x64xf32>
    %21 = arith.addf %18, %20 : vector<16x64xf32>
    %cst_17 = arith.constant 0.000000e+00 : f32
    %22 = vector.broadcast %cst_17 : f32 to vector<16x64xf32>
    %23 = arith.maximumf %21, %22 : vector<16x64xf32>
    %24 = arith.truncf %23 : vector<16x64xf32> to vector<16x64xbf16>
    %c0_18 = arith.constant 0 : index
    %c0_19 = arith.constant 0 : index
    %25 = vector.load %arg8[%c0_18, %c0_19] : memref<64x128xbf16, #tpu.memory_space<vmem>>, vector<64x128xbf16>
    %cst_20 = arith.constant dense<0.000000e+00> : vector<16x128xf32>
    %26 = tpu.matmul %24, %25, %cst_20 {dimension_numbers = #tpu.dot_dimension_numbers<[1], [0], [0], [1], [0, 0, 1, 1], [], []>} : vector<16x64xbf16>, vector<64x128xbf16>, vector<16x128xf32> -> vector<16x128xf32>
    %c0_21 = arith.constant 0 : index
    %c0_22 = arith.constant 0 : index
    %27 = vector.load %arg9[%c0_21, %c0_22] : memref<1x128xf32, #tpu.memory_space<vmem>>, vector<1x128xf32>
    %28 = vector.broadcast %27 : vector<1x128xf32> to vector<16x128xf32>
    %29 = arith.addf %26, %28 : vector<16x128xf32>
    %c0_23 = arith.constant 0 : index
    %c0_24 = arith.constant 0 : index
    %30 = vector.load %arg10[%c0_23, %c0_24] : memref<16x128xf32, #tpu.memory_space<vmem>>, vector<16x128xf32>
    tpu.vector_store %arg10[%c0_23, %c0_24], %29 {strides = array<i32>} : memref<16x128xf32, #tpu.memory_space<vmem>>, vector<16x128xf32>,
    return
  }
  func.func @transform_0(%arg0: i32) -> (i32, i32) {
    %c0_i32 = arith.constant 0 : i32
    %c0_i32_0 = arith.constant 0 : i32
    return %arg0, %c0_i32 : i32, i32
  }
  func.func @transform_1(%arg0: i32) -> (i32, i32) {
    %c0_i32 = arith.constant 0 : i32
    %c0_i32_0 = arith.constant 0 : i32
    %c0_i32_1 = arith.constant 0 : i32
    return %c0_i32, %c0_i32_0 : i32, i32
  }
  func.func @transform_2(%arg0: i32) -> (i32, i32) {
    %c0_i32 = arith.constant 0 : i32
    %c0_i32_0 = arith.constant 0 : i32
    %c0_i32_1 = arith.constant 0 : i32
    return %c0_i32, %c0_i32_0 : i32, i32
  }
  func.func @transform_3(%arg0: i32) -> (i32, i32) {
    %c0_i32 = arith.constant 0 : i32
    %c0_i32_0 = arith.constant 0 : i32
    %c0_i32_1 = arith.constant 0 : i32
    return %c0_i32, %c0_i32_0 : i32, i32
  }
  func.func @transform_4(%arg0: i32) -> (i32, i32) {
    %c0_i32 = arith.constant 0 : i32
    %c0_i32_0 = arith.constant 0 : i32
    %c0_i32_1 = arith.constant 0 : i32
    return %c0_i32, %c0_i32_0 : i32, i32
  }
  func.func @transform_5(%arg0: i32) -> (i32, i32) {
    %c0_i32 = arith.constant 0 : i32
    %c0_i32_0 = arith.constant 0 : i32
    %c0_i32_1 = arith.constant 0 : i32
    return %c0_i32, %c0_i32_0 : i32, i32
  }
  func.func @transform_6(%arg0: i32) -> (i32, i32) {
    %c0_i32 = arith.constant 0 : i32
    %c0_i32_0 = arith.constant 0 : i32
    %c0_i32_1 = arith.constant 0 : i32
    return %c0_i32, %c0_i32_0 : i32, i32
  }
  func.func @transform_7(%arg0: i32) -> (i32, i32) {
    %c0_i32 = arith.constant 0 : i32
    %c0_i32_0 = arith.constant 0 : i32
    %c0_i32_1 = arith.constant 0 : i32
    return %c0_i32, %c0_i32_0 : i32, i32
  }
  func.func @transform_8(%arg0: i32) -> (i32, i32) {
    %c0_i32 = arith.constant 0 : i32
    %c0_i32_0 = arith.constant 0 : i32
    %c0_i32_1 = arith.constant 0 : i32
    return %c0_i32, %c0_i32_0 : i32, i32
  }
  func.func @transform_9(%arg0: i32) -> (i32, i32) {
    %c0_i32 = arith.constant 0 : i32
    %c0_i32_0 = arith.constant 0 : i32
    return %arg0, %c0_i32 : i32, i32
  }
}

</mosaic_0001>

<bundles_post_ra>
// kernel: tpu_custom_call.1
= control target key start
LH: loop header
LB: loop body
LE: loop exit
PB: predicated region body
PF: predicated region fallthrough
CT: control target
= control target key end

     0   :  { %s1708_s0 = inlined_call_operand.vmem [shape: bf16[64,32], index: 0, kind: input, shape index: {}]   ;;  %s1709_s1 = inlined_call_operand.hbm [shape: bf16[32,256], index: 1, kind: input, shape index: {}]   ;;  %s1710_s2 = inlined_call_operand.vmem [shape: f32[1,256], index: 2, kind: input, shape index: {}]   ;;  %s1711_s3 = inlined_call_operand.vmem [shape: bf16[256,128], index: 3, kind: input, shape index: {}]   ;;  %s1712_s4 = inlined_call_operand.hbm [shape: f32[1,128], index: 4, kind: input, shape index: {}]   ;;  %s1713_s5 = inlined_call_operand.vmem [shape: bf16[128,64], index: 5, kind: input, shape index: {}]   ;;  %s1714_s6 = inlined_call_operand.vmem [shape: f32[1,64], index: 6, kind: input, shape index: {}]   ;;  %s1715_s7 = inlined_call_operand.hbm [shape: bf16[64,128], index: 7, kind: input, shape index: {}]   ;;  %s1716_s8 = inlined_call_operand.vmem [shape: f32[1,128], index: 8, kind: input, shape index: {}]   ;;  %s1717_s9 = inlined_call_operand.hbm [shape: f32[64,128], index: 9, kind: output, shape index: {}]  }
   0x1   :  { %1724 = sst [smem:[#allocation15_spill]] %s1712_s4 }
   0x2   :  { %14 = vsyncpa [#allocation3], 0 }
   0x3   :  { %15 = vsyncpa [#allocation6], 0 }
   0x4   :  { %16 = vsyncpa [#allocation4], 0 }
   0x5   :  { %18 = vsyncpa [#allocation4 + $0x1], 0  ;;  %s1418_s30 = smov 0   ;;  %s1420_s10 = smov 0  }
   0x6   :  { %s1422_s11 = smov 0   ;;  %s1424_s12 = smov 0  }
   0x7 LB: > { %1725 = sst [smem:[#allocation12_spill]] %s1349_s11  ;;  %s1439_s13 = sadd.s32 4294967295, %s1353_s12   ;;  %s1353_s12 = sphi %s1424_s12, %s1741_s12   ;;  %s1349_s11 = sphi %s1422_s11, %s1743_s11   ;;  %s1345_s10 = sphi %s1420_s10, %s1745_s10   ;;  %s1341_s30 = sphi %s1418_s30, %s1744_s30  }
   0x8   : > { %s960_s14 = sadd.s32 4294967294, %s1353_s12   ;;  %s1443_s15 = sadd.s32 1, %s1353_s12  }
   0x9   : > { %1726 = sst [smem:[#allocation13_spill]] %s1443_s15  ;;  %s225_s16 = sadd.s32 1, %s1349_s11 }
   0xa   : > { %s222_s17 = ssub.s32 %s1353_s12, %s1443_s15  ;;  %p235_p0 = scmp.ne.s32.totalorder %s1349_s11, %s1345_s10 }
   0xb   : > { %p223_p1 = scmp.eq.s32.totalorder %s222_s17, 0  ;;  %p236_p2 = scmp.eq.s32.totalorder %s1439_s13, 3 }
   0xc   : > { %p241_p3 = scmp.ne.s32.totalorder %s1345_s10, %s1341_s30  ;;  %p242_p4 = scmp.eq.s32.totalorder %s960_s14, 3 }
   0xd   : > { %s1454_s18 = scalar_select %p223_p1, %s1349_s11, %s225_s16  }
   0xe   : > { %p1456_p5 = por %p236_p2, %p235_p0  ;;  %p1460_p6 = por %p242_p4, %p241_p3 }
   0xf   : > { %1727 = sst [smem:[#allocation14_spill]] %s1454_s18  ;;  %p961_p7 = scmp.ge.s32.totalorder %s1353_s12, 1 }
  0x10   : > { %s1728_s19 = scalar_select %p1456_p5, 1, 0 }
  0x11   : > { %s1729_s20 = scalar_select %p1460_p6, 1, 0 }
  0x12   : > { %p249_p8 = scmp.lt.s32.totalorder %s1353_s12, 5  ;;  %p1718_p9 = scmp.eq.s32.totalorder %s1439_s13, 0 }
  0x13   : > { %s1355_s22 = smov [#allocation5]   ;;  %s1356_s24 = smov [#allocation2]  }
  0x14   : > { %p1467_p10 = pnand %p961_p7, %p249_p8  ;;  %s281_s23 = sshll.u32 %s1355_s22, 4  ;;  %s282_s23 = int_to_ptr.vmem [resolvable:$true] %s281_s23 }
  0x15   : > { %s261_s25 = sshll.u32 %s1356_s24, 4  ;;  %s1357_s27 = smov [#allocation7]   ;;  %s1479_s25 = int_to_ptr.vmem [resolvable:$true] %s261_s25 }
  0x16   : > { %s1730_s21 = scalar_select %p1467_p10, 1, 0 }
  0x17   : > { %p1099_p11 = pneg %p1467_p10  ;;  %s1481_s28 = sshll.u32 %s1357_s27, 4  ;;  %s298_s28 = int_to_ptr.vmem [resolvable:$true] %s1481_s28 }
  0x18   : > { %s1732_s4 = sld [smem:[#allocation15_spill]] }
  0x19   : > { %p1475_p12 = pnand %p1718_p9, %p1099_p11 }
  0x1b   : > { %p1491_p0 = pneg %p1475_p12 }
  0x1e   : > { %s1199_s16 = scalar_lea.hbm %s1732_s4, 16 }
  0x1f   : > { %p1200_p13 = scmp.ne.s32.totalorder %s1732_s4, %s1199_s16  ;;  %p1206_p3 = scmp.lt.u32.totalorder %s1199_s16, %s1732_s4 }
  0x21   : > { %p1202_p1 = pnand %p1491_p0, %p1200_p13 }
  0x23   : > { %p1203_p2 = pneg %p1202_p1 }
  0x25   : > { %p1208_p4 = pnand %p1206_p3, %p1203_p2 }
  0x27   : > { %1211 = shalt.err (!%p1208_p4)
}
  0x28   : > { %s1212_s29 = scalar_lea.vmem %s282_s23, 16  ;;  %s1219_s14 = scalar_lea.vmem %s282_s23, 32 }
  0x29   : > { %p1213_p7 = scmp.ne.s32.totalorder %s282_s23, %s1212_s29  ;;  %p1220_p9 = scmp.lt.s32.totalorder %s282_s23, %s282_s23 }
  0x2a   : > { %p1221_p6 = scmp.lt.s32.totalorder %s1219_s14, %s1212_s29 }
  0x2b   : > { %p1215_p8 = pnand %p1213_p7, %p1491_p0 }
  0x2c   : > { %p1222_p5 = por %p1221_p6, %p1220_p9 }
  0x2d   : > { %p1216_p11 = pneg %p1215_p8 }
  0x2f   : > { %p1223_p10 = pnand %p1222_p5, %p1216_p11 }
  0x31   : > { %1226 = shalt.err (!%p1223_p10)
}
  0x32   : > { %1105 = dma.hbm_to_vmem [thread:$0]  (!%p1475_p12), %s1732_s4, 16, %s282_s23, [#allocation6]  }
  0x33   : > { %s1227_s27 = scalar_lea.hbm %s1709_s1, 512 }
  0x34   : > { %p1228_p13 = scmp.ne.s32.totalorder %s1709_s1, %s1227_s27  ;;  %p1234_p5 = scmp.lt.u32.totalorder %s1227_s27, %s1709_s1 }
  0x36   : > { %p1230_p1 = pnand %p1228_p13, %p1491_p0 }
  0x38   : > { %p1231_p6 = pneg %p1230_p1 }
  0x3a   : > { %p1236_p9 = pnand %p1234_p5, %p1231_p6 }
  0x3c   : > { %1239 = shalt.err (!%p1236_p9)
}
  0x3d   : > { %s1240_s23 = scalar_lea.vmem %s1479_s25, 512  ;;  %p1248_p4 = scmp.lt.s32.totalorder %s1479_s25, %s1479_s25 }
  0x3e   : > { %p1241_p10 = scmp.ne.s32.totalorder %s1479_s25, %s1240_s23  ;;  %p1249_p7 = scmp.lt.s32.totalorder %s1240_s23, %s1240_s23 }
  0x40   : > { %p1243_p2 = pnand %p1241_p10, %p1491_p0  ;;  %p1250_p8 = por %p1249_p7, %p1248_p4 }
  0x42   : > { %p1244_p3 = pneg %p1243_p2 }
  0x44   : > { %p1251_p11 = pnand %p1250_p8, %p1244_p3 }
  0x46   : > { %1254 = shalt.err (!%p1251_p11)
}
  0x47   : > { %s1358_s11 = smov 128   ;;  %s1359_s15 = smov 8  }
  0x48   : > { %1102 = dma.hbm_to_vmem [thread:$0]  (!%p1475_p12), %s1709_s1, 512, %s1479_s25, [#allocation3], %s1358_s11, %s1358_s11, %s1359_s15  }
  0x49   : > { %s1255_s27 = scalar_lea.hbm %s1715_s7, 512 }
  0x4a   : > { %p1256_p13 = scmp.ne.s32.totalorder %s1715_s7, %s1255_s27  ;;  %p1262_p5 = scmp.lt.u32.totalorder %s1255_s27, %s1715_s7 }
  0x4c   : > { %p1258_p1 = pnand %p1256_p13, %p1491_p0 }
  0x4e   : > { %p1259_p6 = pneg %p1258_p1 }
  0x50   : > { %p1264_p9 = pnand %p1262_p5, %p1259_p6 }
  0x52   : > { %1267 = shalt.err (!%p1264_p9)
}
  0x53   : > { %s1268_s17 = scalar_lea.vmem %s298_s28, 512  ;;  %p1276_p4 = scmp.lt.s32.totalorder %s298_s28, %s298_s28 }
  0x54   : > { %p1269_p10 = scmp.ne.s32.totalorder %s298_s28, %s1268_s17  ;;  %p1277_p7 = scmp.lt.s32.totalorder %s1268_s17, %s1268_s17 }
  0x56   : > { %p1271_p2 = pnand %p1269_p10, %p1491_p0  ;;  %p1278_p8 = por %p1277_p7, %p1276_p4 }
  0x58   : > { %p1272_p3 = pneg %p1271_p2 }
  0x5a   : > { %p1279_p11 = pnand %p1278_p8, %p1272_p3 }
  0x5c   : > { %1282 = shalt.err (!%p1279_p11)
}
  0x5d   : > { %s1360_s25 = smov 64   ;;  %s1361_s11 = smov 4  }
  0x5e   : > { %1108 = dma.hbm_to_vmem [thread:$0]  (!%p1475_p12), %s1715_s7, 512, %s298_s28, [#allocation6], %s1360_s25, %s1360_s25, %s1361_s11  }
  0x5f   : > { %p1734_p13 = scmp.ne.s32.totalorder %s1730_s21, 0 }
  0x60   : > { %p1735_p1 = scmp.eq.s32.totalorder (!%p1734_p13), %s1439_s13, 0 }
  0x61   : > { %325 = sbr.rel (%p1734_p13) target bundleno = 1014 (0x3f6), region = 56 }
  0x68   : > { %1328 = dma.done.wait (%p1735_p1), [#allocation3], 512   ;;  %p1736_p0 = pmov %p1735_p1 }
  0x6a   : > { %1330 = vsyncadd (%p1736_p0), [#allocation3], 4294966784  ;;  %p1737_p6 = pmov %p1736_p0 }
  0x6b   : > { %p1738_p5 = pmov %p1736_p0 }
  0x6c   : > { %1332 = dma.done.wait (%p1737_p6), [#allocation6], 528  }
  0x6d   : > { %1334 = vsyncadd (%p1738_p5), [#allocation6], 4294966768  ;;  %s971_s26 = sshll.u32 %s1439_s13, 1  ;;  %v1362_v0 = vmov 0   ;;  %v1164_v1 = vld [vmem:[#allocation2 + $0x4] ss:$8 sps:$4 sm:$0xff]   ;;  %v385_v28 = vlaneseq }
  0x6e   : > { %456 = vmatprep.mubr.bf16.mxu0 %v1362_v0  ;;  %p370_p12 = scmp.lt.s32.totalorder %s971_s26, 7  ;;  %v1166_v2 = vld [vmem:[#allocation2] ss:$8 sps:$4 sm:$0xff]   ;;  %424 = vmatprep.subr.bf16.mxu0 %v1164_v1  ;;  %v1167_v3 = vld [vmem:[#allocation2 + $0x14] ss:$8 sps:$4 sm:$0xff]   ;;  %vm420_vm0 = vcmask 261120  }
  0x6f   : > { %425 = vmatpush1.bf16.msra.mxu0 %v1166_v2  ;;  %v1169_v4 = vld [vmem:[#allocation2 + $0x10] ss:$8 sps:$4 sm:$0xff]   ;;  %v1171_v6 = vld [vmem:[%s1711_s3 + $0x40] sm:$0xff]   ;;  %v1173_v8 = vld [vmem:[%s1711_s3 + $0x48] sm:$0xff]   ;;  %v1363_v23 = vmov 0.0   ;;  %v386_v29 = vshrl.u32 %v385_v28, 7 }
  0x70   : > { %s1747_s26 = smov (!%p370_p12, %s971_s26), 7  ;;  %426 = vmatprep.subr.bf16.mxu0 %v1167_v3  ;;  %v1172_v7 = vld [vmem:[%s1711_s3] sm:$0xff]   ;;  %1017 = vmatprep.subr.bf16.mxu1 %v1171_v6  ;;  %v1174_v9 = vld [vmem:[%s1711_s3 + $0x8] sm:$0xff]   ;;  %v1175_v10 = vld [vmem:[%s1711_s3 + $0x50] sm:$0xff]   ;;  %vm1364_vm1 = vmmov 0   ;;  %vm806_vm2 = vcmask 523264  }
  0x71   : > { %s972_s21 = sshll.u32 %s1747_s26, 2  ;;  %1018 = vmatpush3.bf16.msra.mxu1 %v1172_v7  ;;  %v1176_v11 = vld [vmem:[%s1711_s3 + $0x10] sm:$0xff]   ;;  %v1177_v12 = vld [vmem:[%s1711_s3 + $0x58] sm:$0xff]   ;;  %v1179_v14 = vld [vmem:[%s1711_s3 + $0x60] sm:$0xff]   ;;  %v387_v30 = vsub.s32 0, %v386_v29  ;;  %v391_v32 = vsub.s32 1, %v386_v29 }
  0x72   : > { %s373_s22 = scalar_lea.vmem %s1708_s0, %s972_s21  ;;  %1019 = vmatprep.subr.bf16.mxu1 %v1173_v8  ;;  %v1178_v13 = vld [vmem:[%s1711_s3 + $0x18] sm:$0xff]   ;;  %v1180_v15 = vld [vmem:[%s1711_s3 + $0x20] sm:$0xff]   ;;  %v1181_v16 = vld [vmem:[%s1711_s3 + $0x68] sm:$0xff]   ;;  %s366_s14 = sand.u32 1, %s1345_s10  }
  0x73   : > { %v1170_v5 = vld [vmem:[%s373_s22] sm:$0xff]   ;;  %427 = vmatpush1.bf16.msra.mxu0 %v1169_v4  ;;  %v1182_v17 = vld [vmem:[%s1711_s3 + $0x28] sm:$0xff]   ;;  %v1183_v18 = vld [vmem:[%s1711_s3 + $0x70] sm:$0xff]   ;;  %s970_s23 = sshll.u32 %s366_s14, 4  ;;  %s1016_s4 = sshll.u32 %s1439_s13, 8 }
  0x74   : > { %v1184_v19 = vld [vmem:[%s1711_s3 + $0x30] sm:$0xff]   ;;  %v1185_v20 = vld [vmem:[%s1711_s3 + $0x78] sm:$0xff]   ;;  %v1187_v22 = vld [vmem:[%s1713_s5] sm:$0xff]   ;;  %1053 = vmatprep.subr.bf16.mxu0 %v1363_v23  ;;  %s368_s11 = scalar_lea.vmem [#allocation8], %s970_s23  ;;  %s1665_s28 = scalar_lea.hbm %s1717_s9, %s1016_s4 }
  0x75   : > { %1020 = vmatpush3.bf16.msra.mxu1 %v1174_v9  ;;  %v1186_v21 = vld [vmem:[%s1711_s3 + $0x38] sm:$0xff]   ;;  %v1188_v24 = vld [vmem:[%s1713_s5 + $0x8] sm:$0xff]   ;;  %v1189_v25 = vld [vmem:[%s1713_s5 + $0x10] sm:$0xff]   ;;  %s867_s15 = sshll.u32 %s368_s11, 4  ;;  %s1667_s24 = scalar_lea.sflag [#allocation4], %s366_s14  ;;  %s1660_s15 = int_to_ptr.vmem [resolvable:$true] %s867_s15 }
  0x76   : > { %978 = vmatmul.mubr.msk.bf16.vlgmr.msra.gmra.mrb[0].mxu0 %vm420_vm0, %v1170_v5  ;;  %1021 = vmatprep.subr.bf16.mxu1 %v1175_v10  ;;  %v1190_v26 = vld [vmem:[%s1713_s5 + $0x18] sm:$0xff]   ;;  %v1191_v27 = vld [vmem:[%s1713_s5 + $0x20] sm:$0xff]   ;;  %v1192_v49 = vld [vmem:[%s1713_s5 + $0x28] sm:$0xff]   ;;  %s1283_s13 = scalar_lea.vmem %s1660_s15, 256  ;;  %p1739_p10 = scmp.ne.s32.totalorder %s1728_s19, 0 }
  0x77   : > { %1054 = vmatpush3.bf16.msra.mxu0 %v1187_v22  ;;  %v383_v31 = vld [vmem:[%s1710_s2] sm:$0x3]  ;;  %v1193_v50 = vld [vmem:[%s1713_s5 + $0x30] sm:$0xff]   ;;  %v1194_v51 = vld [vmem:[%s1713_s5 + $0x38] sm:$0xff]   ;;  %1069 = vmatprep.mubr.msk.bf16.mxu0 %vm1364_vm1, %v1363_v23  ;;  %p1284_p9 = scmp.ne.s32.totalorder %s1660_s15, %s1283_s13  ;;  %s1365_s22 = smov [#allocation8]  }
  0x78   : > { %1055 = vmatprep.subr.bf16.mxu0 %v1363_v23  ;;  %v388_v33 = vrot.slane %v383_v31, %v387_v30  ;;  %v392_v34 = vrot.slane %v383_v31, %v391_v32  ;;  %v1195_v52 = vld [vmem:[#allocation7] sm:$0xff]   ;;  %v1196_v53 = vld [vmem:[#allocation7 + $0x8] sm:$0xff]   ;;  %v979_v55 = vld [vmem:[#allocation5] ss:$0 sm:$0xff]  ;;  %s1287_s18 = sshll.u32 %s1365_s22, 4  ;;  %s1288_s18 = int_to_ptr.vmem [resolvable:$false] %s1287_s18 }
  0x79   : > { %1022 = vmatpush3.bf16.msra.mxu1 %v1176_v11  ;;  %v1197_v2 = vld [vmem:[#allocation7 + $0x10] sm:$0xff]   ;;  %v1198_v3 = vld [vmem:[#allocation7 + $0x18] sm:$0xff]   ;;  %p1285_p2 = pnand %p1284_p9, %p1739_p10  ;;  %s1289_s16 = scalar_lea.vmem %s1288_s18, 512 }
  0x7a   : > { %1023 = vmatprep.subr.bf16.mxu1 %v1177_v12  ;;  %v996_v4 = vld [vmem:[%s1714_s6] ss:$0 sm:$0xff]  ;;  %p1290_p4 = scmp.lt.s32.totalorder %s1660_s15, %s1288_s18  ;;  %p1291_p7 = scmp.lt.s32.totalorder %s1289_s16, %s1283_s13 }
  0x7b   : > { %1056 = vmatpush3.bf16.msra.mxu0 %v1188_v24  ;;  %p1286_p3 = pneg %p1285_p2 }
  0x7c   : > { %1057 = vmatprep.subr.bf16.mxu0 %v1363_v23  ;;  %p1292_p8 = por %p1291_p7, %p1290_p4 }
  0x7d   : > { %1024 = vmatpush3.bf16.msra.mxu1 %v1178_v13 }
  0x7e   : > { %1025 = vmatprep.subr.bf16.mxu1 %v1179_v14  ;;  %v1005_v14 = vld [vmem:[%s1716_s8] ss:$0 sm:$0xff]  ;;  %p1293_p11 = pnand %p1292_p8, %p1286_p3 }
  0x7f   : > { %1058 = vmatpush3.bf16.msra.mxu0 %v1189_v25 }
  0x80   : > { %1059 = vmatprep.subr.bf16.mxu0 %v1363_v23 }
  0x81   : > { %1026 = vmatpush3.bf16.msra.mxu1 %v1180_v15 }
  0x82   : > { %1027 = vmatprep.subr.bf16.mxu1 %v1181_v16 }
  0x83   : > { %1060 = vmatpush3.bf16.msra.mxu0 %v1190_v26 }
  0x84   : > { %1061 = vmatprep.subr.bf16.mxu0 %v1363_v23 }
  0x85   : > { %1028 = vmatpush3.bf16.msra.mxu1 %v1182_v17 }
  0x86   : > { %1029 = vmatprep.subr.bf16.mxu1 %v1183_v18 }
  0x87   : > { %1062 = vmatpush3.bf16.msra.mxu0 %v1191_v27 }
  0x88   : > { %1063 = vmatprep.subr.bf16.mxu0 %v1363_v23 }
  0x89   : > { %1030 = vmatpush3.bf16.msra.mxu1 %v1184_v19 }
  0x8a   : > { %1031 = vmatprep.subr.bf16.mxu1 %v1185_v20 }
  0x8b   : > { %1064 = vmatpush3.bf16.msra.mxu0 %v1192_v49 }
  0x8c   : > { %1065 = vmatprep.subr.bf16.mxu0 %v1363_v23 }
  0x8d   : > { %1032 = vmatpush3.bf16.msra.mxu1 %v1186_v21 }
  0x8e   : > { %1073 = vmatprep.subr.bf16.mxu1 %v1363_v23 }
  0x8f   : > { %1066 = vmatpush3.bf16.msra.mxu0 %v1193_v50 }
  0x90   : > { %1067 = vmatprep.subr.bf16.mxu0 %v1363_v23 }
  0x93   : > { %1068 = vmatpush3.bf16.msra.mxu0 %v1194_v51 }
 0x149   : > { %v458_v35 = vpop.f32.mrb[0].mxu0 }
 0x14a   : > { %v459_v36 = vadd.f32 %v458_v35, %v388_v33  ;;  %v460_v37 = vpop.f32.mrb[1].mxu0 }
 0x14b   : > { %v461_v38 = vadd.f32 %v460_v37, %v392_v34  ;;  %v462_v39 = vpop.f32.mrb[2].mxu0 }
 0x14c   : > { %v463_v40 = vadd.f32 %v462_v39, %v388_v33  ;;  %v464_v41 = vpop.f32.mrb[3].mxu0  ;;  %v467_v43 = vmax.f32 %v459_v36, 0.0 }
 0x14d   : > { %v465_v42 = vadd.f32 %v464_v41, %v392_v34  ;;  %v468_v45 = vmax.f32 %v461_v38, 0.0 }
 0x14e   : > { %v469_v44 = vmax.f32 %v463_v40, 0.0 }
 0x14f   : > { %v470_v46 = vmax.f32 %v465_v42, 0.0 }
 0x150   : > { %v471_v47 = vpack.c.bf16 %v469_v44, %v467_v43 }
 0x151   : > { %v472_v48 = vpack.c.bf16 %v470_v46, %v468_v45 }
 0x153   : > { %640 = vmatprep.mubr.bf16.mxu1 %v472_v48 }
 0x154   : > { %641 = vmatmul.mubr.bf16.vlgmr.msra.gmra.mrb[0].mxu1 %v471_v47 }
 0x155   : > { %1081 = vmatprep.mubr.msk.bf16.mxu1 %vm1364_vm1, %v1363_v23  ;;  %1074 = vmatpush3.bf16.msra.mxu1 %v1195_v52 }
 0x156   : > { %1075 = vmatprep.subr.bf16.mxu1 %v1363_v23 }
 0x159   : > { %1076 = vmatpush3.bf16.msra.mxu1 %v1196_v53 }
 0x15a   : > { %1077 = vmatprep.subr.bf16.mxu1 %v1363_v23 }
 0x15d   : > { %1078 = vmatpush3.bf16.msra.mxu1 %v1197_v2 }
 0x15e   : > { %1079 = vmatprep.subr.bf16.mxu1 %v1363_v23 }
 0x161   : > { %1080 = vmatpush3.bf16.msra.mxu1 %v1198_v3 }
 0x227   : > { %v1033_v54 = vpop.f32.mrb[0].mxu1 }
 0x228   : > { %v1034_v56 = vpop.f32.mrb[1].mxu1 }
 0x229   : > { %v1035_v57 = vadd.f32 %v1034_v56, %v1033_v54  ;;  %v1036_v58 = vpop.f32.mrb[2].mxu1 }
 0x22a   : > { %v1037_v59 = vpop.f32.mrb[3].mxu1 }
 0x22b   : > { %v643_v60 = vadd.f32 %v1035_v57, %v979_v55  ;;  %v1038_v61 = vadd.f32 %v1037_v59, %v1036_v58 }
 0x22d   : > { %v646_v62 = vadd.f32 %v1038_v61, %v979_v55  ;;  %v649_v63 = vmax.f32 %v643_v60, 0.0 }
 0x22f   : > { %v650_v0 = vmax.f32 %v646_v62, 0.0 }
 0x231   : > { %v651_v1 = vpack.c.bf16 %v650_v0, %v649_v63 }
 0x233   : > { %1070 = vmatmul.mubr.bf16.vlgmr.msra.gmra.mrb[4].mxu0 %v651_v1 }
 0x306   : > { %v757_v5 = vpop.f32.mrb[4].mxu0 }
 0x307   : > { %v758_v6 = vadd.f32 %v996_v4, %v757_v5  ;;  %v1071_v7 = vpop.f32.mrb[5].mxu0 }
 0x308   : > { %v760_v8 = vpop.f32.mrb[6].mxu0 }
 0x309   : > { %v761_v9 = vadd.f32 %v996_v4, %v760_v8  ;;  %v1072_v10 = vpop.f32.mrb[7].mxu0  ;;  %v764_v11 = vmax.f32 %v758_v6, 0.0 }
 0x30b   : > { %v765_v12 = vmax.f32 %v761_v9, 0.0 }
 0x30d   : > { %v766_v13 = vpack.c.bf16 %v765_v12, %v764_v11 }
 0x30f   : > { %1082 = vmatmul.mubr.msk.bf16.vlgmr.msra.gmra.mrb[4].mxu1 %vm806_vm2, %v766_v13 }
 0x3e2   : > { %v844_v15 = vpop.f32.mrb[4].mxu1 }
 0x3e3   : > { %v845_v16 = vadd.f32 %v1005_v14, %v844_v15  ;;  %v1083_v17 = vpop.f32.mrb[5].mxu1 }
 0x3e4   : > { %v847_v18 = vpop.f32.mrb[6].mxu1 }
 0x3e5   : > { %851 = vst [vmem:[%s368_s11] sm:$0xff] %v845_v16  ;;  %v848_v19 = vadd.f32 %v1005_v14, %v847_v18  ;;  %v1084_v20 = vpop.f32.mrb[7].mxu1 }
 0x3e7   : > { %852 = vst [vmem:[%s368_s11 + $0x8] sm:$0xff] %v848_v19 }
 0x3e8   : > { %1296 = shalt.err (!%p1293_p11)
}
 0x3e9   : > { %s1297_s27 = scalar_lea.hbm %s1665_s28, 256  ;;  %s1301_s23 = scalar_lea.hbm %s1717_s9, 1024 }
 0x3ea   : > { %p1298_p13 = scmp.ne.s32.totalorder %s1665_s28, %s1297_s27  ;;  %p1302_p6 = scmp.lt.u32.totalorder %s1665_s28, %s1717_s9 }
 0x3eb   : > { %p1303_p5 = scmp.lt.u32.totalorder %s1301_s23, %s1297_s27  ;;  %p1305_p9 = scmp.lt.u32.totalorder %s1297_s27, %s1665_s28 }
 0x3ec   : > { %p1299_p1 = pnand %p1298_p13, %p1739_p10 }
 0x3ed   : > { %p1304_p12 = por %p1303_p5, %p1302_p6 }
 0x3ee   : > { %p1300_p0 = pneg %p1299_p1 }
 0x3ef   : > { %p1306_p2 = por %p1305_p9, %p1304_p12 }
 0x3f1   : > { %p1307_p3 = pnand %p1306_p2, %p1300_p0 }
 0x3f3   : > { %1310 = shalt.err (!%p1307_p3)
}
 0x3f4   : > { %s1366_s11 = smov 128   ;;  %s1367_s4 = smov 8  }
 0x3f5   : > { %1097 = dma.vmem_to_hbm [thread:$0]  (%p1739_p10), %s1660_s15, 256, %s1665_s28, %s1667_s24, %s1366_s11, %s1366_s11, %s1367_s4  }
 0x3f6 PF: > { %p1119_p4 = scmp.ge.s32.totalorder %s1353_s12, 2  ;;  %s882_s26 = sand.u32 1, %s1341_s30  }
 0x3f7   : > { %p1740_p7 = scmp.ne.s32.totalorder %s1729_s20, 0  ;;  %s883_s21 = scalar_lea.sflag [#allocation4], %s882_s26 }
 0x3f9   : > { %p1110_p8 = pnand %p1119_p4, %p1740_p7 }
 0x3fb   : > { %1336 = dma.done.wait (!%p1110_p8), %s883_s21, 256  }
 0x3fc   : > { %1338 = vsyncadd (!%p1110_p8), %s883_s21, 4294967040  ;;  %s1741_s12 = sld [smem:[#allocation13_spill]]  ;;  %s1742_s13 = sld [smem:[#allocation12_spill]] }
 0x3fd   : > { %s1743_s11 = sld [smem:[#allocation14_spill]]  ;;  %s1744_s30 = smov %s1345_s10 }
 0x402   : > { %p21_p11 = scmp.ge.s32.totalorder %s1741_s12, 6   ;;  %s1745_s10 = smov %s1742_s13 }
 0x404   :  { %23 = sbr.rel (!%p21_p11) target bundleno = 7 (0x7), region = 104 }
 0x40b   :  { %888 = vsyncpa [#allocation3], 1 }
 0x40c   :  { %890 = vsyncpa [#allocation3 + $0x1], 1 }
 0x40d   :  { %891 = vsyncpa [#allocation6], 1 }
 0x40e   :  { %892 = vsyncpa [#allocation4], 1 }
 0x40f   :  { %894 = vsyncpa [#allocation4 + $0x1], 1 }

</bundles_post_ra>
